<compile_context>
chip_gen: v7x
topology: tpu7x:2x2x1
jax: 0.10.0
libtpu: 0.0.40
codegen_flags: <defaults>
</compile_context>

<pallas_src>
import functools
import numpy as np

import jax
import jax.numpy as jnp
from jax.experimental import pallas as pl
from jax.experimental.pallas import tpu as pltpu


# ----------------------------- anchor utilities (plain numpy glue) ------------

def generate_anchor_base(base_size=16, ratios=(0.5, 1, 2), anchor_scales=(8, 16, 32)):
    anchor_base = np.zeros((len(ratios) * len(anchor_scales), 4), dtype=np.float32)
    for i in range(len(ratios)):
        for j in range(len(anchor_scales)):
            h = base_size * anchor_scales[j] * np.sqrt(ratios[i])
            w = base_size * anchor_scales[j] * np.sqrt(1.0 / ratios[i])
            index = i * len(anchor_scales) + j
            anchor_base[index, 0] = -h / 2.0
            anchor_base[index, 1] = -w / 2.0
            anchor_base[index, 2] = h / 2.0
            anchor_base[index, 3] = w / 2.0
    return anchor_base


def _enumerate_shifted_anchor(anchor_base, feat_stride, height, width):
    shift_x = np.arange(0, width * feat_stride, feat_stride)
    shift_y = np.arange(0, height * feat_stride, feat_stride)
    shift_x, shift_y = np.meshgrid(shift_x, shift_y)
    shift = np.stack((shift_x.ravel(), shift_y.ravel(),
                      shift_x.ravel(), shift_y.ravel()), axis=1)
    A = anchor_base.shape[0]
    K = shift.shape[0]
    anchor = anchor_base.reshape((1, A, 4)) + shift.reshape((K, 1, 4))
    return anchor.reshape((K * A, 4)).astype(np.float32)


# ----------------------------- Pallas kernel ----------------------------------

def _rpn_kernel(xt_ref, w1_ref, b1_ref, whd_ref, bhd_ref, out_ref, acc_ref,
                *, n_taps):
    """Grid = (batch, spatial_tile, tap); tap is the innermost reduction axis.

    xt_ref  : (1, 1, TS, C)  bf16  tap-shifted input window (DMA-delivered)
    w1_ref  : (1, C, M)      bf16  this tap's 3x3-conv weight slab
    b1_ref  : (1, M)         f32
    whd_ref : (M, 6A)        bf16  fused [loc | score] 1x1 head weights
    bhd_ref : (1, 6A)        f32
    out_ref : (1, TS, 6A)    f32   fused head output (written on last tap)
    acc_ref : (TS, M)        f32   VMEM scratch accumulator
    """
    t = pl.program_id(2)

    @pl.when(t == 0)
    def _init():
        acc_ref[...] = jnp.zeros_like(acc_ref)

    # bf16 x bf16 matmul on the MXU with f32 accumulation into VMEM scratch.
    acc_ref[...] += jnp.dot(xt_ref[0, 0, :, :], w1_ref[0, :, :],
                            preferred_element_type=jnp.float32)

    @pl.when(t == n_taps - 1)
    def _finalize():
        hidden = jnp.maximum(acc_ref[...] + b1_ref[...], 0.0)
        hidden = hidden.astype(whd_ref.dtype)
        out_ref[0, :, :] = (jnp.dot(hidden, whd_ref[...],
                                    preferred_element_type=jnp.float32)
                            + bhd_ref[...])


# ----------------------------- wrapper -----------------------------------------

def _choose_spatial_tile(hw):
    for ts in (512, 256, 128, 64, 32, 16, 8):
        if hw % ts == 0:
            return ts
    return hw  # falls back to the full extent (block == array dim is always legal)


def rpn_forward(x_nchw, params, feat_stride=16):
    N, C, H, W = x_nchw.shape
    M = params["b1"].shape[-1]
    A = params["bs"].shape[-1] // 2
    HW = H * W
    ts = _choose_spatial_tile(HW)
    n_spatial = HW // ts
    n_taps = 9

    # NCHW -> NHWC (bf16), zero-pad spatial dims by 1 (PyTorch padding=1) and
    # stack the 9 shifted tap windows on a leading axis so each tap reaches the
    # kernel as a plain DMA'd (TS, C) slab.  At large C this duplication would be
    # replaced by halo DMA (pl.Element offsets); for the RPN head the input is
    # small relative to the conv FLOPs.
    xp = jnp.pad(jnp.transpose(x_nchw, (0, 2, 3, 1)).astype(jnp.bfloat16),
                 ((0, 0), (1, 1), (1, 1), (0, 0)))
    xtaps = jnp.stack(
        [xp[:, ky:ky + H, kx:kx + W, :].reshape(N, HW, C)
         for ky in range(3) for kx in range(3)], axis=0)          # (9, N, HW, C)

    w1 = params["w1"].astype(jnp.bfloat16)                        # (9, C, M) tap-major
    b1 = params["b1"].astype(jnp.float32)                         # (1, M)
    # Fused [loc | score] head: one lane-denser (M, 6A) matmul + (1, 6A) bias.
    whd = jnp.concatenate([params["wl"], params["ws"]], axis=1).astype(jnp.bfloat16)
    bhd = jnp.concatenate([params["bl"], params["bs"]], axis=1).astype(jnp.float32)

    kernel = functools.partial(_rpn_kernel, n_taps=n_taps)

    flops = 2 * N * HW * M * (n_taps * C + 6 * A)
    bytes_accessed = int(xtaps.size * 2 + w1.size * 2 + whd.size * 2
                         + b1.size * 4 + bhd.size * 4 + N * HW * 6 * A * 4)

    fused = pl.pallas_call(
        kernel,
        out_shape=jax.ShapeDtypeStruct((N, HW, 6 * A), jnp.float32),
        grid=(N, n_spatial, n_taps),
        in_specs=[
            pl.BlockSpec((1, 1, ts, C), lambda n, s, t: (t, n, s, 0)),
            pl.BlockSpec((1, C, M), lambda n, s, t: (t, 0, 0)),
            pl.BlockSpec((1, M), lambda n, s, t: (0, 0)),
            pl.BlockSpec((M, 6 * A), lambda n, s, t: (0, 0)),
            pl.BlockSpec((1, 6 * A), lambda n, s, t: (0, 0)),
        ],
        out_specs=pl.BlockSpec((1, ts, 6 * A), lambda n, s, t: (n, s, 0)),
        scratch_shapes=[pltpu.VMEM((ts, M), jnp.float32)],
        compiler_params=pltpu.CompilerParams(
            dimension_semantics=("parallel", "parallel", "arbitrary")),
        cost_estimate=pl.CostEstimate(flops=flops, transcendentals=0,
                                      bytes_accessed=bytes_accessed),
    )(xtaps, w1, b1, whd, bhd)

    # Split the fused head; element order matches permute(0,2,3,1).view(n,-1,k).
    rpn_locs = fused[:, :, :4 * A].reshape(N, HW * A, 4)
    rpn_scores = fused[:, :, 4 * A:].reshape(N, HW * A, 2)

    rpn_softmax_scores = jax.nn.softmax(rpn_scores, axis=-1)
    rpn_fg_scores = rpn_softmax_scores[:, :, 1].reshape(N, -1)

    anchor_np = _enumerate_shifted_anchor(generate_anchor_base(), feat_stride, H, W)
    anchor = jnp.asarray(anchor_np)[None, :, :]  # (1, H*W*A, 4)

    # TODO(synk): proposal_layer (NMS-based ROI selection) intentionally omitted.
    return rpn_locs, rpn_scores, rpn_fg_scores, anchor


# ----------------------------- deterministic parameter init --------------------

def init_rpn_params(key, in_channels, mid_channels, n_anchor):
    k1, k2, k3 = jax.random.split(key, 3)
    std = 0.01  # normal_init(m, 0, 0.01); biases zeroed
    w1 = jax.random.normal(k1, (3, 3, in_channels, mid_channels), jnp.float32) * std
    ws = jax.random.normal(k2, (mid_channels, 2 * n_anchor), jnp.float32) * std
    wl = jax.random.normal(k3, (mid_channels, 4 * n_anchor), jnp.float32) * std
    return {
        # NOTE: PyTorch weights would need permuting (M,C,3,3)->(ky,kx,C,M).reshape(9,C,M)
        "w1": w1.reshape(9, in_channels, mid_channels),
        "b1": jnp.zeros((1, mid_channels), jnp.float32),
        "ws": ws,
        "bs": jnp.zeros((1, 2 * n_anchor), jnp.float32),
        "wl": wl,
        "bl": jnp.zeros((1, 4 * n_anchor), jnp.float32),
    }


# ----------------------------- main ---------------------------------------------

if __name__ == "__main__":
    # Small shapes consistent with the module: batch=2, in_channels=4,
    # mid_channels=32, spatial=16x16, A = 3 ratios * 3 scales = 9 anchors.
    N, C, H, W = 2, 4, 16, 16
    MID = 32
    N_ANCHOR = 9
    FEAT_STRIDE = 16

    key = jax.random.PRNGKey(0)
    k_x, k_p = jax.random.split(key)
    x = jax.random.normal(k_x, (N, C, H, W), jnp.float32)
    params = init_rpn_params(k_p, C, MID, N_ANCHOR)

    rpn_locs, rpn_scores, rpn_fg_scores, anchor = jax.block_until_ready(
        rpn_forward(x, params, feat_stride=FEAT_STRIDE))

    assert rpn_locs.shape == (N, H * W * N_ANCHOR, 4)
    assert rpn_scores.shape == (N, H * W * N_ANCHOR, 2)
    assert rpn_fg_scores.shape == (N, H * W * N_ANCHOR)
    assert anchor.shape == (1, H * W * N_ANCHOR, 4)

    print("KERNEL_OK")
</pallas_src>

<mosaic_0001>
module attributes {stable_mosaic.version = 11 : i64} {
  func.func @_rpn_kernel(%arg0: i32, %arg1: i32, %arg2: i32, %arg3: memref<1x1x256x4xbf16, #tpu.memory_space<vmem>>, %arg4: memref<1x4x32xbf16, #tpu.memory_space<vmem>>, %arg5: memref<1x32xf32, #tpu.memory_space<vmem>>, %arg6: memref<32x54xbf16, #tpu.memory_space<vmem>>, %arg7: memref<1x54xf32, #tpu.memory_space<vmem>>, %arg8: memref<1x256x54xf32, #tpu.memory_space<vmem>>, %arg9: memref<256x32xf32, #tpu.memory_space<vmem>>) attributes {dimension_semantics = [#tpu.dimension_semantics<parallel>, #tpu.dimension_semantics<parallel>, #tpu.dimension_semantics<arbitrary>], iteration_bounds = array<i64: 2, 1, 9>, scalar_prefetch = 0 : i64, scratch_operands = 1 : i64, tpu.core_type = #tpu.core_type<tc>, window_params = [{transform_indices = @transform_0, window_bounds = array<i64: 1, 1, 256, 4>}, {transform_indices = @transform_1, window_bounds = array<i64: 1, 4, 32>}, {pipeline_mode = #tpu.pipeline_mode<synchronous>, transform_indices = @transform_2, window_bounds = array<i64: 1, 32>}, {pipeline_mode = #tpu.pipeline_mode<synchronous>, transform_indices = @transform_3, window_bounds = array<i64: 32, 54>}, {pipeline_mode = #tpu.pipeline_mode<synchronous>, transform_indices = @transform_4, window_bounds = array<i64: 1, 54>}, {transform_indices = @transform_5, window_bounds = array<i64: 1, 256, 54>}]} {
    %c0_i32 = arith.constant 0 : i32
    %0 = arith.cmpi eq, %arg2, %c0_i32 : i32
    %1 = arith.extui %0 : i1 to i32
    %c0_i32_0 = arith.constant 0 : i32
    %2 = arith.cmpi ne, %1, %c0_i32_0 : i32
    scf.if %2 {
      %cst_12 = arith.constant 0.000000e+00 : f32
      %14 = vector.broadcast %cst_12 : f32 to vector<256x32xf32>
      %c0_13 = arith.constant 0 : index
      %c0_14 = arith.constant 0 : index
      %15 = vector.load %arg9[%c0_13, %c0_14] : memref<256x32xf32, #tpu.memory_space<vmem>>, vector<256x32xf32>
      tpu.vector_store %arg9[%c0_13, %c0_14], %14 {strides = array<i32>} : memref<256x32xf32, #tpu.memory_space<vmem>>, vector<256x32xf32>,
    } else {
    }
    %c0 = arith.constant 0 : index
    %c0_1 = arith.constant 0 : index
    %3 = vector.load %arg9[%c0, %c0_1] : memref<256x32xf32, #tpu.memory_space<vmem>>, vector<256x32xf32>
    %c0_2 = arith.constant 0 : index
    %c0_3 = arith.constant 0 : index
    %c0_4 = arith.constant 0 : index
    %c0_5 = arith.constant 0 : index
    %4 = vector.load %arg3[%c0_2, %c0_3, %c0_4, %c0_5] : memref<1x1x256x4xbf16, #tpu.memory_space<vmem>>, vector<1x1x256x4xbf16>
    %5 = vector.shape_cast %4 : vector<1x1x256x4xbf16> to vector<256x4xbf16>
    %c0_6 = arith.constant 0 : index
    %c0_7 = arith.constant 0 : index
    %c0_8 = arith.constant 0 : index
    %6 = vector.load %arg4[%c0_6, %c0_7, %c0_8] : memref<1x4x32xbf16, #tpu.memory_space<vmem>>, vector<1x4x32xbf16>
    %7 = vector.shape_cast %6 : vector<1x4x32xbf16> to vector<4x32xbf16>
    %cst = arith.constant dense<0.000000e+00> : vector<256x32xf32>
    %8 = tpu.matmul %5, %7, %cst {dimension_numbers = #tpu.dot_dimension_numbers<[1], [0], [0], [1], [0, 0, 1, 1], [], []>} : vector<256x4xbf16>, vector<4x32xbf16>, vector<256x32xf32> -> vector<256x32xf32>
    %9 = arith.addf %3, %8 : vector<256x32xf32>
    %c0_9 = arith.constant 0 : index
    %c0_10 = arith.constant 0 : index
    %10 = vector.load %arg9[%c0_9, %c0_10] : memref<256x32xf32, #tpu.memory_space<vmem>>, vector<256x32xf32>
    tpu.vector_store %arg9[%c0_9, %c0_10], %9 {strides = array<i32>} : memref<256x32xf32, #tpu.memory_space<vmem>>, vector<256x32xf32>,
    %c8_i32 = arith.constant 8 : i32
    %11 = arith.cmpi eq, %arg2, %c8_i32 : i32
    %12 = arith.extui %11 : i1 to i32
    %c0_i32_11 = arith.constant 0 : i32
    %13 = arith.cmpi ne, %12, %c0_i32_11 : i32
    scf.if %13 {
      %c0_12 = arith.constant 0 : index
      %c0_13 = arith.constant 0 : index
      %14 = vector.load %arg9[%c0_12, %c0_13] : memref<256x32xf32, #tpu.memory_space<vmem>>, vector<256x32xf32>
      %c0_14 = arith.constant 0 : index
      %c0_15 = arith.constant 0 : index
      %15 = vector.load %arg5[%c0_14, %c0_15] : memref<1x32xf32, #tpu.memory_space<vmem>>, vector<1x32xf32>
      %16 = vector.broadcast %15 : vector<1x32xf32> to vector<256x32xf32>
      %17 = arith.addf %14, %16 : vector<256x32xf32>
      %cst_16 = arith.constant 0.000000e+00 : f32
      %18 = vector.broadcast %cst_16 : f32 to vector<256x32xf32>
      %19 = arith.maximumf %17, %18 : vector<256x32xf32>
      %20 = arith.truncf %19 : vector<256x32xf32> to vector<256x32xbf16>
      %c0_17 = arith.constant 0 : index
      %c0_18 = arith.constant 0 : index
      %21 = vector.load %arg6[%c0_17, %c0_18] : memref<32x54xbf16, #tpu.memory_space<vmem>>, vector<32x54xbf16>
      %cst_19 = arith.constant dense<0.000000e+00> : vector<256x54xf32>
      %22 = tpu.matmul %20, %21, %cst_19 {dimension_numbers = #tpu.dot_dimension_numbers<[1], [0], [0], [1], [0, 0, 1, 1], [], []>} : vector<256x32xbf16>, vector<32x54xbf16>, vector<256x54xf32> -> vector<256x54xf32>
      %c0_20 = arith.constant 0 : index
      %c0_21 = arith.constant 0 : index
      %23 = vector.load %arg7[%c0_20, %c0_21] : memref<1x54xf32, #tpu.memory_space<vmem>>, vector<1x54xf32>
      %24 = vector.broadcast %23 : vector<1x54xf32> to vector<256x54xf32>
      %25 = arith.addf %22, %24 : vector<256x54xf32>
      %c0_22 = arith.constant 0 : index
      %c0_23 = arith.constant 0 : index
      %c0_24 = arith.constant 0 : index
      %26 = vector.load %arg8[%c0_22, %c0_23, %c0_24] : memref<1x256x54xf32, #tpu.memory_space<vmem>>, vector<1x256x54xf32>
      %27 = vector.shape_cast %26 : vector<1x256x54xf32> to vector<256x54xf32>
      %28 = vector.shape_cast %25 : vector<256x54xf32> to vector<1x256x54xf32>
      tpu.vector_store %arg8[%c0_22, %c0_23, %c0_24], %28 {strides = array<i32>} : memref<1x256x54xf32, #tpu.memory_space<vmem>>, vector<1x256x54xf32>,
    } else {
    }
    return
  }
  func.func @transform_0(%arg0: i32, %arg1: i32, %arg2: i32) -> (i32, i32, i32, i32) {
    %c0_i32 = arith.constant 0 : i32
    %c0_i32_0 = arith.constant 0 : i32
    return %arg2, %arg0, %arg1, %c0_i32 : i32, i32, i32, i32
  }
  func.func @transform_1(%arg0: i32, %arg1: i32, %arg2: i32) -> (i32, i32, i32) {
    %c0_i32 = arith.constant 0 : i32
    %c0_i32_0 = arith.constant 0 : i32
    %c0_i32_1 = arith.constant 0 : i32
    return %arg2, %c0_i32, %c0_i32_0 : i32, i32, i32
  }
  func.func @transform_2(%arg0: i32, %arg1: i32, %arg2: i32) -> (i32, i32) {
    %c0_i32 = arith.constant 0 : i32
    %c0_i32_0 = arith.constant 0 : i32
    %c0_i32_1 = arith.constant 0 : i32
    return %c0_i32, %c0_i32_0 : i32, i32
  }
  func.func @transform_3(%arg0: i32, %arg1: i32, %arg2: i32) -> (i32, i32) {
    %c0_i32 = arith.constant 0 : i32
    %c0_i32_0 = arith.constant 0 : i32
    %c0_i32_1 = arith.constant 0 : i32
    return %c0_i32, %c0_i32_0 : i32, i32
  }
  func.func @transform_4(%arg0: i32, %arg1: i32, %arg2: i32) -> (i32, i32) {
    %c0_i32 = arith.constant 0 : i32
    %c0_i32_0 = arith.constant 0 : i32
    %c0_i32_1 = arith.constant 0 : i32
    return %c0_i32, %c0_i32_0 : i32, i32
  }
  func.func @transform_5(%arg0: i32, %arg1: i32, %arg2: i32) -> (i32, i32, i32) {
    %c0_i32 = arith.constant 0 : i32
    %c0_i32_0 = arith.constant 0 : i32
    return %arg0, %arg1, %c0_i32 : i32, i32, i32
  }
}

</mosaic_0001>

<bundles_post_ra>
// kernel: tpu_custom_call.1
= control target key start
LH: loop header
LB: loop body
LE: loop exit
PB: predicated region body
PF: predicated region fallthrough
CT: control target
= control target key end

     0   :  { %s1574_s18 = smov 0   ;;  %s1576_s19 = smov 0   ;;  %s1897_s0 = inlined_call_operand.vmem [shape: bf16[9,2,256,4], index: 0, kind: input, shape index: {}]   ;;  %s1898_s1 = inlined_call_operand.vmem [shape: bf16[9,4,32], index: 1, kind: input, shape index: {}]   ;;  %s1899_s2 = inlined_call_operand.vmem [shape: f32[1,32], index: 2, kind: input, shape index: {}]   ;;  %s1900_s3 = inlined_call_operand.vmem [shape: bf16[32,54], index: 3, kind: input, shape index: {}]   ;;  %s1901_s4 = inlined_call_operand.vmem [shape: f32[1,54], index: 4, kind: input, shape index: {}]   ;;  %s1902_s5 = inlined_call_operand.vmem [shape: f32[2,256,54], index: 5, kind: output, shape index: {}]  }
   0x1   :  { %s1578_s20 = smov 0   ;;  %s1580_s21 = smov 0  }
   0x2   :  { %s1582_s22 = smov 0  }
   0x3 LB: > { %s27_s23 = sadd.s32 1, %s1533_s20  ;;  %s34_s24 = sadd.s32 1, %s1537_s21  ;;  %s1541_s22 = sphi %s1582_s22, %s15_s22   ;;  %s1537_s21 = sphi %s1580_s21, %s1906_s21   ;;  %s1533_s20 = sphi %s1578_s20, %s1905_s20   ;;  %s1529_s19 = sphi %s1576_s19, %s1904_s19   ;;  %s1525_s18 = sphi %s1574_s18, %s1903_s18  }
   0x4   : > { %p28_p0 = scmp.ge.s32.totalorder %s27_s23, 9  ;;  %p1267_p1 = scmp.ge.s32.totalorder %s1541_s22, 1 }
   0x5   : > { %p230_p2 = scmp.lt.s32.totalorder %s1541_s22, 19 }
   0x6   : > { %s1908_s23 = smov (%p28_p0, %s27_s23), 0  ;;  %s1910_s24 = smov (!%p28_p0, %s34_s24), %s1537_s21 }
   0x7   : > { %p231_p3 = pnand %p1267_p1, %p230_p2  ;;  %p36_p4 = scmp.ge.s32.totalorder %s1910_s24, 2 }
   0x8   : > { %p275_p5 = scmp.lt.s32.totalorder (!%p231_p3), %s1525_s18, 8  ;;  %p277_p6 = scmp.lt.s32.totalorder (!%p231_p3), %s1529_s19, 1 }
   0x9   : > { %s1912_s24 = smov (%p36_p4, %s1910_s24), 0  ;;  %234 = sbr.rel (%p231_p3) target bundleno = 523 (0x20b), region = 40 }
   0xa   : > { %p1274_p7 = scmp.ne.s32.totalorder (!%p231_p3), %s1525_s18, 0 }
  0x10   : > { %s276_s25 = scalar_select %p275_p5, %s1525_s18, 8 }
  0x11   : > { %s1914_s19 = smov (!%p277_p6, %s1529_s19), 1  ;;  %306 = sbr.rel (%p1274_p7) target bundleno = 35 (0x23), region = 44 }
  0x12   : > { %s1269_s26 = sshll.u32 %s276_s25, 6  ;;  %s1271_s27 = sshll.u32 %s276_s25, 1  ;;  %vm307_vm0 = vcmask (!%p1274_p7), 261120   ;;  %v1543_v0 = vmov (!%p1274_p7), 0.0  }
  0x13   : > { %s1268_s28 = sshll.u32 %s1914_s19, 5  ;;  %s1611_s6 = scalar_lea.vmem %s1898_s1, %s1271_s27  ;;  %308 = vst.msk [vmem:[#allocation2] sm:$0xff] (!%p1274_p7), %vm307_vm0, %v1543_v0  ;;  %309 = vst.msk [vmem:[#allocation2 + $0x8] sm:$0xff] (!%p1274_p7), %vm307_vm0, %v1543_v0 }
  0x14   : > { %s284_s7 = sadd.s32 %s1269_s26, %s1268_s28  ;;  %s1330_s8 = sshll.u32 %s1914_s19, 8  ;;  %310 = vst.msk [vmem:[#allocation2 + $0x10] sm:$0xff] (!%p1274_p7), %vm307_vm0, %v1543_v0  ;;  %311 = vst.msk [vmem:[#allocation2 + $0x18] sm:$0xff] (!%p1274_p7), %vm307_vm0, %v1543_v0 }
  0x15   : > { %s1270_s9 = sshll.u32 %s284_s7, 2  ;;  %s1616_s12 = scalar_lea.vmem %s1902_s5, %s1330_s8  ;;  %312 = vst.msk [vmem:[#allocation2 + $0x20] sm:$0xff] (!%p1274_p7), %vm307_vm0, %v1543_v0  ;;  %313 = vst.msk [vmem:[#allocation2 + $0x28] sm:$0xff] (!%p1274_p7), %vm307_vm0, %v1543_v0 }
  0x16   : > { %s1621_s15 = scalar_lea.vmem %s1897_s0, %s1270_s9  ;;  %314 = vst.msk [vmem:[#allocation2 + $0x30] sm:$0xff] (!%p1274_p7), %vm307_vm0, %v1543_v0  ;;  %315 = vst.msk [vmem:[#allocation2 + $0x38] sm:$0xff] (!%p1274_p7), %vm307_vm0, %v1543_v0 }
  0x17   : > { %316 = vst.msk [vmem:[#allocation2 + $0x40] sm:$0xff] (!%p1274_p7), %vm307_vm0, %v1543_v0  ;;  %317 = vst.msk [vmem:[#allocation2 + $0x48] sm:$0xff] (!%p1274_p7), %vm307_vm0, %v1543_v0 }
  0x18   : > { %318 = vst.msk [vmem:[#allocation2 + $0x50] sm:$0xff] %vm307_vm0, %v1543_v0  ;;  %319 = vst.msk [vmem:[#allocation2 + $0x58] sm:$0xff] %vm307_vm0, %v1543_v0 }
  0x19   : > { %320 = vst.msk [vmem:[#allocation2 + $0x60] sm:$0xff] %vm307_vm0, %v1543_v0  ;;  %321 = vst.msk [vmem:[#allocation2 + $0x68] sm:$0xff] %vm307_vm0, %v1543_v0 }
  0x1a   : > { %322 = vst.msk [vmem:[#allocation2 + $0x70] sm:$0xff] %vm307_vm0, %v1543_v0  ;;  %323 = vst.msk [vmem:[#allocation2 + $0x78] sm:$0xff] %vm307_vm0, %v1543_v0 }
  0x1b   : > { %324 = vst.msk [vmem:[#allocation2 + $0x80] sm:$0xff] %vm307_vm0, %v1543_v0  ;;  %325 = vst.msk [vmem:[#allocation2 + $0x88] sm:$0xff] %vm307_vm0, %v1543_v0 }
  0x1c   : > { %326 = vst.msk [vmem:[#allocation2 + $0x90] sm:$0xff] %vm307_vm0, %v1543_v0  ;;  %327 = vst.msk [vmem:[#allocation2 + $0x98] sm:$0xff] %vm307_vm0, %v1543_v0 }
  0x1d   : > { %328 = vst.msk [vmem:[#allocation2 + $0xa0] sm:$0xff] %vm307_vm0, %v1543_v0  ;;  %329 = vst.msk [vmem:[#allocation2 + $0xa8] sm:$0xff] %vm307_vm0, %v1543_v0 }
  0x1e   : > { %330 = vst.msk [vmem:[#allocation2 + $0xb0] sm:$0xff] %vm307_vm0, %v1543_v0  ;;  %331 = vst.msk [vmem:[#allocation2 + $0xb8] sm:$0xff] %vm307_vm0, %v1543_v0 }
  0x1f   : > { %332 = vst.msk [vmem:[#allocation2 + $0xc0] sm:$0xff] %vm307_vm0, %v1543_v0  ;;  %333 = vst.msk [vmem:[#allocation2 + $0xc8] sm:$0xff] %vm307_vm0, %v1543_v0 }
  0x20   : > { %334 = vst.msk [vmem:[#allocation2 + $0xd0] sm:$0xff] %vm307_vm0, %v1543_v0  ;;  %335 = vst.msk [vmem:[#allocation2 + $0xd8] sm:$0xff] %vm307_vm0, %v1543_v0 }
  0x21   : > { %336 = vst.msk [vmem:[#allocation2 + $0xe0] sm:$0xff] %vm307_vm0, %v1543_v0  ;;  %337 = vst.msk [vmem:[#allocation2 + $0xe8] sm:$0xff] %vm307_vm0, %v1543_v0 }
  0x22   : > { %338 = vst.msk [vmem:[#allocation2 + $0xf0] sm:$0xff] %vm307_vm0, %v1543_v0  ;;  %339 = vst.msk [vmem:[#allocation2 + $0xf8] sm:$0xff] %vm307_vm0, %v1543_v0 }
  0x23 PF: > { %v404_v1 = vld [vmem:[%s1611_s6] sm:$0x3]  ;;  %vm534_vm1 = vcmask 1041408   ;;  %vm485_vm2 = vcmask 31744   ;;  %v1487_v5 = vld [vmem:[%s1621_s15 + $0x8] sm:$0xff]   ;;  %v1489_v7 = vld [vmem:[%s1621_s15 + $0x10] sm:$0xff]  }
  0x24   : > { %v1485_v2 = vld [vmem:[%s1621_s15] sm:$0xff]   ;;  %1442 = vmatprep.subr.msk.bf16.mxu0 %vm534_vm1, %v404_v1  ;;  %1443 = vmatprep.subr.msk.bf16.mxu1 %vm534_vm1, %v404_v1  ;;  %v536_v3 = vsel %vm534_vm1, %v404_v1, 0  ;;  %v1488_v6 = vld [vmem:[%s1621_s15 + $0x48] sm:$0xff]   ;;  %v1490_v8 = vld [vmem:[%s1621_s15 + $0x50] sm:$0xff]   ;;  %vm731_vm3 = vcmask 261120   ;;  %p1307_p8 = scmp.ne.s32.totalorder %s1525_s18, 8 }
  0x25   : > { %1367 = vmatpush3.bf16.msra.mxu0 %v536_v3  ;;  %1437 = vmatpush3.bf16.msra.mxu1 %v536_v3  ;;  %v1486_v4 = vld [vmem:[%s1621_s15 + $0x40] sm:$0xff]   ;;  %v1491_v9 = vld [vmem:[%s1621_s15 + $0x18] sm:$0xff]   ;;  %v1495_v13 = vld [vmem:[%s1621_s15 + $0x28] sm:$0xff]   ;;  %vm1119_vm4 = vcmask (!%p1307_p8), 441344  }
  0x26   : > { %1368 = vmatprep.mubr.msk.bf16.mxu0 %vm485_vm2, %v1485_v2  ;;  %1384 = vmatprep.mubr.msk.bf16.mxu1 %vm485_vm2, %v1486_v4  ;;  %v1492_v10 = vld [vmem:[%s1621_s15 + $0x58] sm:$0xff]   ;;  %v1493_v11 = vld [vmem:[%s1621_s15 + $0x20] sm:$0xff]   ;;  %v1496_v14 = vld [vmem:[%s1621_s15 + $0x68] sm:$0xff]  }
  0x27   : > { %v1494_v12 = vld [vmem:[%s1621_s15 + $0x60] sm:$0xff]   ;;  %v1497_v15 = vld [vmem:[%s1621_s15 + $0x30] sm:$0xff]   ;;  %v1499_v17 = vld [vmem:[%s1621_s15 + $0x38] sm:$0xff]  }
  0x28   : > { %1369 = vmatmul.mubr.msk.bf16.vlgmr.msra.gmra.mrb[0].mxu0 %vm485_vm2, %v1487_v5  ;;  %1385 = vmatmul.mubr.msk.bf16.vlgmr.msra.gmra.mrb[0].mxu1 %vm485_vm2, %v1488_v6  ;;  %v1498_v16 = vld [vmem:[%s1621_s15 + $0x70] sm:$0xff]   ;;  %v1500_v18 = vld [vmem:[%s1621_s15 + $0x78] sm:$0xff]   ;;  %v340_v21 = vld [vmem:[#allocation2] sm:$0xff] }
  0x29   : > { %1372 = vmatprep.mubr.msk.bf16.mxu0 %vm485_vm2, %v1489_v7  ;;  %1388 = vmatprep.mubr.msk.bf16.mxu1 %vm485_vm2, %v1490_v8  ;;  %v342_v19 = vld [vmem:[#allocation2 + $0x10] sm:$0xff]  ;;  %v356_v23 = vld [vmem:[#allocation2 + $0x80] sm:$0xff]  ;;  %v343_v24 = vld [vmem:[#allocation2 + $0x18] sm:$0xff] }
  0x2a   : > { %v358_v20 = vld [vmem:[#allocation2 + $0x90] sm:$0xff]  ;;  %v359_v28 = vld [vmem:[#allocation2 + $0x98] sm:$0xff]  ;;  %v341_v29 = vld [vmem:[#allocation2 + $0x8] sm:$0xff] }
  0x2b   : > { %v357_v34 = vld [vmem:[#allocation2 + $0x88] sm:$0xff]  ;;  %v346_v43 = vld [vmem:[#allocation2 + $0x30] sm:$0xff]  ;;  %v344_v45 = vld [vmem:[#allocation2 + $0x20] sm:$0xff] }
  0x2c   : > { %v362_v44 = vld [vmem:[#allocation2 + $0xb0] sm:$0xff]  ;;  %v360_v47 = vld [vmem:[#allocation2 + $0xa0] sm:$0xff]  ;;  %v347_v48 = vld [vmem:[#allocation2 + $0x38] sm:$0xff] }
  0x2d   : > { %v363_v52 = vld [vmem:[#allocation2 + $0xb8] sm:$0xff]  ;;  %v345_v53 = vld [vmem:[#allocation2 + $0x28] sm:$0xff]  ;;  %v350_v3 = vld [vmem:[#allocation2 + $0x50] sm:$0xff] }
  0x2e   : > { %v361_v58 = vld [vmem:[#allocation2 + $0xa8] sm:$0xff]  ;;  %v366_v4 = vld [vmem:[#allocation2 + $0xd0] sm:$0xff]  ;;  %v348_v5 = vld [vmem:[#allocation2 + $0x40] sm:$0xff] }
  0x2f   : > { %v364_v7 = vld [vmem:[#allocation2 + $0xc0] sm:$0xff]  ;;  %v351_v8 = vld [vmem:[#allocation2 + $0x58] sm:$0xff] }
  0x30   : > { %1373 = vmatmul.mubr.msk.bf16.gmra.mrb[4].mxu0 %vm485_vm2, %v1491_v9  ;;  %1389 = vmatmul.mubr.msk.bf16.gmra.mrb[4].mxu1 %vm485_vm2, %v1492_v10 }
  0x31   : > { %1376 = vmatprep.mubr.msk.bf16.mxu0 %vm485_vm2, %v1493_v11  ;;  %1392 = vmatprep.mubr.msk.bf16.mxu1 %vm485_vm2, %v1494_v12  ;;  %v367_v12 = vld [vmem:[#allocation2 + $0xd8] sm:$0xff] }
  0x38   : > { %1377 = vmatmul.mubr.msk.bf16.gmra.mrb[8].mxu0 %vm485_vm2, %v1495_v13  ;;  %1393 = vmatmul.mubr.msk.bf16.gmra.mrb[8].mxu1 %vm485_vm2, %v1496_v14  ;;  %v349_v13 = vld [vmem:[#allocation2 + $0x48] sm:$0xff] }
  0x39   : > { %1380 = vmatprep.mubr.msk.bf16.mxu0 %vm485_vm2, %v1497_v15  ;;  %1396 = vmatprep.mubr.msk.bf16.mxu1 %vm485_vm2, %v1498_v16 }
  0x40   : > { %1381 = vmatmul.mubr.msk.bf16.gmra.mrb[12].mxu0 %vm485_vm2, %v1499_v17  ;;  %1397 = vmatmul.mubr.msk.bf16.gmra.mrb[12].mxu1 %vm485_vm2, %v1500_v18  ;;  %v365_v18 = vld [vmem:[#allocation2 + $0xc8] sm:$0xff] }
  0xfb   : > { %v1370_v22 = vpop.f32.mrb[0].mxu0  ;;  %v1386_v26 = vpop.f32.mrb[0].mxu1 }
  0xfc   : > { %v701_v25 = vadd.f32 %v1370_v22, %v342_v19  ;;  %v572_v27 = vpop.f32.mrb[1].mxu0  ;;  %v717_v30 = vadd.f32 %v1386_v26, %v358_v20  ;;  %v636_v32 = vpop.f32.mrb[1].mxu1 }
  0xfd   : > { %v699_v31 = vadd.f32 %v572_v27, %v340_v21  ;;  %v1371_v33 = vpop.f32.mrb[2].mxu0  ;;  %v715_v35 = vadd.f32 %v636_v32, %v356_v23  ;;  %v1387_v37 = vpop.f32.mrb[2].mxu1  ;;  %v354_v27 = vld [vmem:[#allocation2 + $0x70] sm:$0xff]  ;;  %v355_v32 = vld [vmem:[#allocation2 + $0x78] sm:$0xff] }
  0xfe   : > { %734 = vst.msk [vmem:[#allocation2 + $0x10] sm:$0xff] %vm731_vm3, %v701_v25  ;;  %v702_v36 = vadd.f32 %v1371_v33, %v343_v24  ;;  %v575_v38 = vpop.f32.mrb[3].mxu0  ;;  %750 = vst.msk [vmem:[#allocation2 + $0x90] sm:$0xff] %vm731_vm3, %v717_v30  ;;  %v718_v39 = vadd.f32 %v1387_v37, %v359_v28  ;;  %v639_v41 = vpop.f32.mrb[3].mxu1  ;;  %v370_v28 = vld [vmem:[#allocation2 + $0xf0] sm:$0xff]  ;;  %v353_v37 = vld [vmem:[#allocation2 + $0x68] sm:$0xff] }
  0xff   : > { %732 = vst.msk [vmem:[#allocation2] sm:$0xff] %vm731_vm3, %v699_v31  ;;  %v700_v40 = vadd.f32 %v575_v38, %v341_v29  ;;  %748 = vst.msk [vmem:[#allocation2 + $0x80] sm:$0xff] %vm731_vm3, %v715_v35  ;;  %v716_v42 = vadd.f32 %v639_v41, %v357_v34  ;;  %v352_v29 = vld [vmem:[#allocation2 + $0x60] sm:$0xff] }
 0x100   : > { %735 = vst.msk [vmem:[#allocation2 + $0x18] sm:$0xff] %vm731_vm3, %v702_v36  ;;  %751 = vst.msk [vmem:[#allocation2 + $0x98] sm:$0xff] %vm731_vm3, %v718_v39  ;;  %v368_v31 = vld [vmem:[#allocation2 + $0xe0] sm:$0xff]  ;;  %v371_v36 = vld [vmem:[#allocation2 + $0xf8] sm:$0xff] }
 0x101   : > { %733 = vst.msk [vmem:[#allocation2 + $0x8] sm:$0xff] %vm731_vm3, %v700_v40  ;;  %749 = vst.msk [vmem:[#allocation2 + $0x88] sm:$0xff] %vm731_vm3, %v716_v42  ;;  %v369_v42 = vld [vmem:[#allocation2 + $0xe8] sm:$0xff] }
 0x103   : > { %v1374_v46 = vpop.f32.mrb[4].mxu0  ;;  %v1390_v50 = vpop.f32.mrb[4].mxu1 }
 0x104   : > { %v705_v49 = vadd.f32 %v1374_v46, %v346_v43  ;;  %v588_v51 = vpop.f32.mrb[5].mxu0  ;;  %v721_v54 = vadd.f32 %v1390_v50, %v362_v44  ;;  %v652_v56 = vpop.f32.mrb[5].mxu1 }
 0x105   : > { %v703_v55 = vadd.f32 %v588_v51, %v344_v45  ;;  %v1375_v57 = vpop.f32.mrb[6].mxu0  ;;  %v719_v59 = vadd.f32 %v652_v56, %v360_v47  ;;  %v1391_v61 = vpop.f32.mrb[6].mxu1  ;;  %v1501_v51 = vld [vmem:[%s1900_s3] sm:$0xff] (!%p1307_p8)  }
 0x106   : > { %738 = vst.msk [vmem:[#allocation2 + $0x30] sm:$0xff] %vm731_vm3, %v705_v49  ;;  %v706_v60 = vadd.f32 %v1375_v57, %v347_v48  ;;  %v591_v62 = vpop.f32.mrb[7].mxu0  ;;  %754 = vst.msk [vmem:[#allocation2 + $0xb0] sm:$0xff] %vm731_vm3, %v721_v54  ;;  %v722_v63 = vadd.f32 %v1391_v61, %v363_v52  ;;  %v655_v1 = vpop.f32.mrb[7].mxu1  ;;  %v1502_v52 = vld [vmem:[%s1900_s3 + $0x8] sm:$0xff] (!%p1307_p8)   ;;  %1400 = vmatprep.subr.bf16.mxu0 (!%p1307_p8), %v1501_v51  ;;  %1438 = vmatprep.subr.bf16.mxu1 (!%p1307_p8), %v1501_v51 }
 0x107   : > { %736 = vst.msk [vmem:[#allocation2 + $0x20] sm:$0xff] %vm731_vm3, %v703_v55  ;;  %v704_v0 = vadd.f32 %v591_v62, %v345_v53  ;;  %752 = vst.msk [vmem:[#allocation2 + $0xa0] sm:$0xff] %vm731_vm3, %v719_v59  ;;  %v720_v2 = vadd.f32 %v655_v1, %v361_v58  ;;  %v768_v53 = vld [vmem:[#allocation2] sm:$0xff] (!%p1307_p8)  ;;  %1401 = vmatpush3.bf16.msra.mxu0 (!%p1307_p8), %v1501_v51  ;;  %1440 = vmatpush3.bf16.msra.mxu1 (!%p1307_p8), %v1501_v51  ;;  %v786_v1 = vld [vmem:[#allocation2 + $0x90] sm:$0xff] (!%p1307_p8) }
 0x108   : > { %739 = vst.msk [vmem:[#allocation2 + $0x38] sm:$0xff] %vm731_vm3, %v706_v60  ;;  %755 = vst.msk [vmem:[#allocation2 + $0xb8] sm:$0xff] %vm731_vm3, %v722_v63  ;;  %v769_v54 = vld [vmem:[#allocation2 + $0x8] sm:$0xff] (!%p1307_p8)  ;;  %v1731_v55 = vld [vmem:[%s1899_s2] ss:$0 sm:$0xff] (!%p1307_p8)  ;;  %1402 = vmatprep.subr.bf16.mxu0 (!%p1307_p8), %v1502_v52  ;;  %1439 = vmatprep.subr.bf16.mxu1 (!%p1307_p8), %v1502_v52 }
 0x109   : > { %737 = vst.msk [vmem:[#allocation2 + $0x28] sm:$0xff] %vm731_vm3, %v704_v0  ;;  %753 = vst.msk [vmem:[#allocation2 + $0xa8] sm:$0xff] %vm731_vm3, %v720_v2  ;;  %v807_v56 = vadd.f32 (!%p1307_p8), %v1731_v55, %v768_v53  ;;  %v808_v57 = vadd.f32 (!%p1307_p8), %v1731_v55, %v769_v54  ;;  %v784_v58 = vld [vmem:[#allocation2 + $0x80] sm:$0xff] (!%p1307_p8)  ;;  %v785_v59 = vld [vmem:[#allocation2 + $0x88] sm:$0xff] (!%p1307_p8) }
 0x10a   : > { %v770_v60 = vld [vmem:[#allocation2 + $0x10] sm:$0xff] (!%p1307_p8)  ;;  %v823_v61 = vadd.f32 (!%p1307_p8), %v1731_v55, %v784_v58  ;;  %v824_v62 = vadd.f32 (!%p1307_p8), %v1731_v55, %v785_v59  ;;  %v771_v63 = vld [vmem:[#allocation2 + $0x18] sm:$0xff] (!%p1307_p8) }
 0x10b   : > { %v1378_v6 = vpop.f32.mrb[8].mxu0  ;;  %v1394_v10 = vpop.f32.mrb[8].mxu1  ;;  %v809_v0 = vadd.f32 (!%p1307_p8), %v1731_v55, %v770_v60  ;;  %v787_v2 = vld [vmem:[#allocation2 + $0x98] sm:$0xff] (!%p1307_p8)  ;;  %1403 = vmatpush3.bf16.msra.mxu0 (!%p1307_p8), %v1502_v52  ;;  %1441 = vmatpush3.bf16.msra.mxu1 (!%p1307_p8), %v1502_v52 }
 0x10c   : > { %v709_v9 = vadd.f32 %v1378_v6, %v350_v3  ;;  %v604_v11 = vpop.f32.mrb[9].mxu0  ;;  %v725_v14 = vadd.f32 %v1394_v10, %v366_v4  ;;  %v668_v16 = vpop.f32.mrb[9].mxu1  ;;  %v839_v3 = vmax.f32 (!%p1307_p8), %v807_v56, 0.0  ;;  %v840_v4 = vmax.f32 (!%p1307_p8), %v808_v57, 0.0 }
 0x10d   : > { %v707_v15 = vadd.f32 %v604_v11, %v348_v5  ;;  %v1379_v17 = vpop.f32.mrb[10].mxu0  ;;  %v723_v19 = vadd.f32 %v668_v16, %v364_v7  ;;  %v1395_v21 = vpop.f32.mrb[10].mxu1  ;;  %v810_v5 = vadd.f32 (!%p1307_p8), %v1731_v55, %v771_v63  ;;  %v825_v6 = vadd.f32 (!%p1307_p8), %v1731_v55, %v786_v1 }
 0x10e   : > { %742 = vst.msk [vmem:[#allocation2 + $0x50] sm:$0xff] %vm731_vm3, %v709_v9  ;;  %v710_v20 = vadd.f32 %v1379_v17, %v351_v8  ;;  %v607_v22 = vpop.f32.mrb[11].mxu0  ;;  %758 = vst.msk [vmem:[#allocation2 + $0xd0] sm:$0xff] %vm731_vm3, %v725_v14  ;;  %v726_v23 = vadd.f32 %v1395_v21, %v367_v12  ;;  %v671_v25 = vpop.f32.mrb[11].mxu1  ;;  %v772_v7 = vld [vmem:[#allocation2 + $0x20] sm:$0xff] (!%p1307_p8)  ;;  %v855_v10 = vmax.f32 (!%p1307_p8), %v823_v61, 0.0  ;;  %v871_v16 = vpack.c.bf16 (!%p1307_p8), %v840_v4, %v839_v3 }
 0x10f   : > { %740 = vst.msk [vmem:[#allocation2 + $0x40] sm:$0xff] %vm731_vm3, %v707_v15  ;;  %v708_v24 = vadd.f32 %v607_v22, %v349_v13  ;;  %756 = vst.msk [vmem:[#allocation2 + $0xc0] sm:$0xff] %vm731_vm3, %v723_v19  ;;  %v724_v26 = vadd.f32 %v671_v25, %v365_v18  ;;  %v788_v9 = vld [vmem:[#allocation2 + $0xa0] sm:$0xff] (!%p1307_p8)  ;;  %v856_v11 = vmax.f32 (!%p1307_p8), %v824_v62, 0.0  ;;  %v841_v12 = vmax.f32 (!%p1307_p8), %v809_v0, 0.0  ;;  %v774_v15 = vld [vmem:[#allocation2 + $0x30] sm:$0xff] (!%p1307_p8) }
 0x110   : > { %743 = vst.msk [vmem:[#allocation2 + $0x58] sm:$0xff] %vm731_vm3, %v710_v20  ;;  %759 = vst.msk [vmem:[#allocation2 + $0xd8] sm:$0xff] %vm731_vm3, %v726_v23  ;;  %v773_v8 = vld [vmem:[#allocation2 + $0x28] sm:$0xff] (!%p1307_p8)  ;;  %v826_v13 = vadd.f32 (!%p1307_p8), %v1731_v55, %v787_v2  ;;  %v842_v17 = vmax.f32 (!%p1307_p8), %v810_v5, 0.0  ;;  %v857_v18 = vmax.f32 (!%p1307_p8), %v825_v6, 0.0  ;;  %v811_v19 = vadd.f32 (!%p1307_p8), %v1731_v55, %v772_v7  ;;  %v775_v20 = vld [vmem:[#allocation2 + $0x38] sm:$0xff] (!%p1307_p8)  ;;  %1404 = vmatprep.mubr.msk.bf16.mxu0 (!%p1307_p8), %vm731_vm3, %v871_v16 }
 0x111   : > { %741 = vst.msk [vmem:[#allocation2 + $0x48] sm:$0xff] %vm731_vm3, %v708_v24  ;;  %757 = vst.msk [vmem:[#allocation2 + $0xc8] sm:$0xff] %vm731_vm3, %v724_v26  ;;  %v789_v14 = vld [vmem:[#allocation2 + $0xa8] sm:$0xff] (!%p1307_p8)  ;;  %v879_v21 = vpack.c.bf16 (!%p1307_p8), %v856_v11, %v855_v10  ;;  %v812_v23 = vadd.f32 (!%p1307_p8), %v1731_v55, %v773_v8  ;;  %v827_v24 = vadd.f32 (!%p1307_p8), %v1731_v55, %v788_v9  ;;  %v790_v25 = vld [vmem:[#allocation2 + $0xb0] sm:$0xff] (!%p1307_p8) }
 0x112   : > { %v858_v22 = vmax.f32 (!%p1307_p8), %v826_v13, 0.0  ;;  %v791_v26 = vld [vmem:[#allocation2 + $0xb8] sm:$0xff] (!%p1307_p8) }
 0x113   : > { %v1382_v30 = vpop.f32.mrb[12].mxu0  ;;  %v1398_v34 = vpop.f32.mrb[12].mxu1  ;;  %767 = sbr.rel (%p1307_p8) target bundleno = 523 (0x20b), region = 48  ;;  %1420 = vmatprep.mubr.msk.bf16.mxu1 (!%p1307_p8), %vm731_vm3, %v879_v21 }
 0x114   : > { %v713_v33 = vadd.f32 %v1382_v30, %v354_v27  ;;  %v620_v35 = vpop.f32.mrb[13].mxu0  ;;  %v729_v38 = vadd.f32 %v1398_v34, %v370_v28  ;;  %v684_v40 = vpop.f32.mrb[13].mxu1  ;;  %v872_v27 = vpack.c.bf16 (!%p1307_p8), %v842_v17, %v841_v12  ;;  %v843_v28 = vmax.f32 (!%p1307_p8), %v811_v19, 0.0 }
 0x115   : > { %v711_v39 = vadd.f32 %v620_v35, %v352_v29  ;;  %v1383_v41 = vpop.f32.mrb[14].mxu0  ;;  %v727_v43 = vadd.f32 %v684_v40, %v368_v31  ;;  %v1399_v45 = vpop.f32.mrb[14].mxu1  ;;  %v828_v29 = vadd.f32 (!%p1307_p8), %v1731_v55, %v789_v14  ;;  %v813_v30 = vadd.f32 (!%p1307_p8), %v1731_v55, %v774_v15  ;;  %v794_v53 = vld [vmem:[#allocation2 + $0xd0] sm:$0xff] (!%p1307_p8) }
 0x116   : > { %746 = vst.msk [vmem:[#allocation2 + $0x70] sm:$0xff] %vm731_vm3, %v713_v33  ;;  %v714_v44 = vadd.f32 %v1383_v41, %v355_v32  ;;  %v623_v46 = vpop.f32.mrb[15].mxu0  ;;  %762 = vst.msk [vmem:[#allocation2 + $0xf0] sm:$0xff] %vm731_vm3, %v729_v38  ;;  %v730_v47 = vadd.f32 %v1399_v45, %v371_v36  ;;  %v687_v49 = vpop.f32.mrb[15].mxu1  ;;  %v776_v31 = vld [vmem:[#allocation2 + $0x40] sm:$0xff] (!%p1307_p8)  ;;  %v880_v33 = vpack.c.bf16 (!%p1307_p8), %v858_v22, %v857_v18  ;;  %v844_v34 = vmax.f32 (!%p1307_p8), %v812_v23, 0.0 }
 0x117   : > { %744 = vst.msk [vmem:[#allocation2 + $0x60] sm:$0xff] %vm731_vm3, %v711_v39  ;;  %v712_v48 = vadd.f32 %v623_v46, %v353_v37  ;;  %760 = vst.msk [vmem:[#allocation2 + $0xe0] sm:$0xff] %vm731_vm3, %v727_v43  ;;  %v728_v50 = vadd.f32 %v687_v49, %v369_v42  ;;  %v859_v35 = vmax.f32 (!%p1307_p8), %v827_v24, 0.0  ;;  %v814_v36 = vadd.f32 (!%p1307_p8), %v1731_v55, %v775_v20  ;;  %v792_v37 = vld [vmem:[#allocation2 + $0xc0] sm:$0xff] (!%p1307_p8)  ;;  %v795_v54 = vld [vmem:[#allocation2 + $0xd8] sm:$0xff] (!%p1307_p8) }
 0x118   : > { %747 = vst.msk [vmem:[#allocation2 + $0x78] sm:$0xff] %vm731_vm3, %v714_v44  ;;  %763 = vst.msk [vmem:[#allocation2 + $0xf8] sm:$0xff] %vm731_vm3, %v730_v47  ;;  %v777_v32 = vld [vmem:[#allocation2 + $0x48] sm:$0xff] (!%p1307_p8)  ;;  %1405 = vmatmul.mubr.msk.bf16.vlgmr.msra.gmra.mrb[0].mxu0 (!%p1307_p8), %vm731_vm3, %v872_v27  ;;  %v860_v38 = vmax.f32 (!%p1307_p8), %v828_v29, 0.0  ;;  %v845_v39 = vmax.f32 (!%p1307_p8), %v813_v30, 0.0  ;;  %v829_v40 = vadd.f32 (!%p1307_p8), %v1731_v55, %v790_v25  ;;  %v830_v41 = vadd.f32 (!%p1307_p8), %v1731_v55, %v791_v26  ;;  %v778_v47 = vld [vmem:[#allocation2 + $0x50] sm:$0xff] (!%p1307_p8) }
 0x119   : > { %745 = vst.msk [vmem:[#allocation2 + $0x68] sm:$0xff] %vm731_vm3, %v712_v48  ;;  %761 = vst.msk [vmem:[#allocation2 + $0xe8] sm:$0xff] %vm731_vm3, %v728_v50  ;;  %v793_v42 = vld [vmem:[#allocation2 + $0xc8] sm:$0xff] (!%p1307_p8)  ;;  %1421 = vmatmul.mubr.msk.bf16.vlgmr.msra.gmra.mrb[0].mxu1 (!%p1307_p8), %vm731_vm3, %v880_v33  ;;  %v873_v43 = vpack.c.bf16 (!%p1307_p8), %v844_v34, %v843_v28  ;;  %v846_v44 = vmax.f32 (!%p1307_p8), %v814_v36, 0.0  ;;  %v815_v45 = vadd.f32 (!%p1307_p8), %v1731_v55, %v776_v31  ;;  %v779_v48 = vld [vmem:[#allocation2 + $0x58] sm:$0xff] (!%p1307_p8) }
 0x11a   : > { %v816_v46 = vadd.f32 %v1731_v55, %v777_v32  ;;  %v881_v49 = vpack.c.bf16 %v860_v38, %v859_v35  ;;  %v861_v50 = vmax.f32 %v829_v40, 0.0  ;;  %v862_v51 = vmax.f32 %v830_v41, 0.0 }
 0x11b   : > { %v831_v52 = vadd.f32 %v1731_v55, %v792_v37  ;;  %1408 = vmatprep.mubr.msk.bf16.mxu0 %vm731_vm3, %v873_v43  ;;  %v874_v56 = vpack.c.bf16 %v846_v44, %v845_v39  ;;  %v847_v57 = vmax.f32 %v815_v45, 0.0  ;;  %v832_v59 = vadd.f32 %v1731_v55, %v793_v42 }
 0x11c   : > { %v848_v58 = vmax.f32 %v816_v46, 0.0  ;;  %1424 = vmatprep.mubr.msk.bf16.mxu1 %vm731_vm3, %v881_v49  ;;  %v882_v62 = vpack.c.bf16 %v862_v51, %v861_v50  ;;  %v817_v0 = vadd.f32 %v1731_v55, %v778_v47  ;;  %v818_v1 = vadd.f32 %v1731_v55, %v779_v48 }
 0x11d   : > { %v863_v63 = vmax.f32 %v831_v52, 0.0  ;;  %v864_v4 = vmax.f32 %v832_v59, 0.0  ;;  %v833_v5 = vadd.f32 %v1731_v55, %v794_v53  ;;  %v834_v6 = vadd.f32 %v1731_v55, %v795_v54  ;;  %v782_v19 = vld [vmem:[#allocation2 + $0x70] sm:$0xff] }
 0x11e   : > { %v780_v60 = vld [vmem:[#allocation2 + $0x60] sm:$0xff]  ;;  %v875_v3 = vpack.c.bf16 %v848_v58, %v847_v57  ;;  %v849_v12 = vmax.f32 %v817_v0, 0.0  ;;  %v850_v13 = vmax.f32 %v818_v1, 0.0  ;;  %v798_v23 = vld [vmem:[#allocation2 + $0xf0] sm:$0xff]  ;;  %v821_v26 = vadd.f32 %v1731_v55, %v782_v19 }
 0x11f   : > { %v796_v2 = vld [vmem:[#allocation2 + $0xe0] sm:$0xff]  ;;  %v819_v8 = vadd.f32 %v1731_v55, %v780_v60  ;;  %v883_v10 = vpack.c.bf16 %v864_v4, %v863_v63  ;;  %v865_v15 = vmax.f32 %v833_v5, 0.0  ;;  %v866_v16 = vmax.f32 %v834_v6, 0.0  ;;  %v783_v20 = vld [vmem:[#allocation2 + $0x78] sm:$0xff] }
 0x120   : > { %v781_v61 = vld [vmem:[#allocation2 + $0x68] sm:$0xff]  ;;  %v835_v11 = vadd.f32 %v1731_v55, %v796_v2  ;;  %1409 = vmatmul.mubr.msk.bf16.gmra.mrb[4].mxu0 %vm731_vm3, %v874_v56  ;;  %v799_v24 = vld [vmem:[#allocation2 + $0xf8] sm:$0xff]  ;;  %v876_v25 = vpack.c.bf16 %v850_v13, %v849_v12  ;;  %v822_v27 = vadd.f32 %v1731_v55, %v783_v20  ;;  %v837_v30 = vadd.f32 %v1731_v55, %v798_v23 }
 0x121   : > { %v797_v7 = vld [vmem:[#allocation2 + $0xe8] sm:$0xff]  ;;  %v820_v9 = vadd.f32 %v1731_v55, %v781_v61  ;;  %1425 = vmatmul.mubr.msk.bf16.gmra.mrb[4].mxu1 %vm731_vm3, %v882_v62  ;;  %1412 = vmatprep.mubr.msk.bf16.mxu0 %vm731_vm3, %v875_v3  ;;  %v851_v17 = vmax.f32 %v819_v8, 0.0  ;;  %v884_v28 = vpack.c.bf16 %v866_v16, %v865_v15  ;;  %v838_v31 = vadd.f32 %v1731_v55, %v799_v24 }
 0x122   : > { %v836_v14 = vadd.f32 %v1731_v55, %v797_v7  ;;  %1428 = vmatprep.mubr.msk.bf16.mxu1 %vm731_vm3, %v883_v10  ;;  %v867_v21 = vmax.f32 %v835_v11, 0.0  ;;  %v853_v33 = vmax.f32 %v821_v26, 0.0  ;;  %v854_v34 = vmax.f32 %v822_v27, 0.0  ;;  %v1784_v55 = vld [vmem:[%s1901_s4] ss:$0 sm:$0xff] }
 0x123   : > { %v852_v18 = vmax.f32 %v820_v9, 0.0  ;;  %v869_v35 = vmax.f32 %v837_v30, 0.0  ;;  %v870_v36 = vmax.f32 %v838_v31, 0.0 }
 0x124   : > { %v868_v22 = vmax.f32 %v836_v14, 0.0  ;;  %v878_v37 = vpack.c.bf16 %v854_v34, %v853_v33 }
 0x125   : > { %v877_v29 = vpack.c.bf16 %v852_v18, %v851_v17  ;;  %v886_v38 = vpack.c.bf16 %v870_v36, %v869_v35 }
 0x126   : > { %v885_v32 = vpack.c.bf16 %v868_v22, %v867_v21 }
 0x128   : > { %1413 = vmatmul.mubr.msk.bf16.gmra.mrb[8].mxu0 %vm731_vm3, %v876_v25 }
 0x129   : > { %1429 = vmatmul.mubr.msk.bf16.gmra.mrb[8].mxu1 %vm731_vm3, %v884_v28  ;;  %1416 = vmatprep.mubr.msk.bf16.mxu0 %vm731_vm3, %v877_v29 }
 0x12a   : > { %1432 = vmatprep.mubr.msk.bf16.mxu1 %vm731_vm3, %v885_v32 }
 0x130   : > { %1417 = vmatmul.mubr.msk.bf16.gmra.mrb[12].mxu0 %vm731_vm3, %v878_v37 }
 0x131   : > { %1433 = vmatmul.mubr.msk.bf16.gmra.mrb[12].mxu1 %vm731_vm3, %v886_v38 }
 0x1eb   : > { %v1406_v39 = vpop.f32.mrb[0].mxu0 }
 0x1ec   : > { %v1001_v40 = vadd.f32 %v1406_v39, %v1784_v55  ;;  %v1422_v41 = vpop.f32.mrb[0].mxu1  ;;  %v992_v42 = vpop.f32.mrb[1].mxu0 }
 0x1ed   : > { %v1065_v43 = vadd.f32 %v1422_v41, %v1784_v55  ;;  %v993_v44 = vadd.f32 %v1784_v55, %v992_v42  ;;  %v1056_v45 = vpop.f32.mrb[1].mxu1  ;;  %v1407_v46 = vpop.f32.mrb[2].mxu0 }
 0x1ee   : > { %1122 = vst.msk [vmem:[%s1616_s12 + $0x10] sm:$0xff] %vm1119_vm4, %v1001_v40  ;;  %v1057_v47 = vadd.f32 %v1784_v55, %v1056_v45  ;;  %v1004_v48 = vadd.f32 %v1407_v46, %v1784_v55  ;;  %v1423_v49 = vpop.f32.mrb[2].mxu1  ;;  %v995_v50 = vpop.f32.mrb[3].mxu0 }
 0x1ef   : > { %1138 = vst.msk [vmem:[%s1616_s12 + $0x90] sm:$0xff] %vm1119_vm4, %v1065_v43  ;;  %1120 = vst.msk [vmem:[%s1616_s12] sm:$0xff] %vm1119_vm4, %v993_v44  ;;  %v1068_v51 = vadd.f32 %v1423_v49, %v1784_v55  ;;  %v996_v52 = vadd.f32 %v1784_v55, %v995_v50  ;;  %v1059_v53 = vpop.f32.mrb[3].mxu1 }
 0x1f0   : > { %1136 = vst.msk [vmem:[%s1616_s12 + $0x80] sm:$0xff] %vm1119_vm4, %v1057_v47  ;;  %1123 = vst.msk [vmem:[%s1616_s12 + $0x18] sm:$0xff] %vm1119_vm4, %v1004_v48  ;;  %v1060_v54 = vadd.f32 %v1784_v55, %v1059_v53 }
 0x1f1   : > { %1139 = vst.msk [vmem:[%s1616_s12 + $0x98] sm:$0xff] %vm1119_vm4, %v1068_v51  ;;  %1121 = vst.msk [vmem:[%s1616_s12 + $0x8] sm:$0xff] %vm1119_vm4, %v996_v52 }
 0x1f2   : > { %1137 = vst.msk [vmem:[%s1616_s12 + $0x88] sm:$0xff] %vm1119_vm4, %v1060_v54 }
 0x1f3   : > { %v1410_v56 = vpop.f32.mrb[4].mxu0 }
 0x1f4   : > { %v1017_v57 = vadd.f32 %v1410_v56, %v1784_v55  ;;  %v1426_v58 = vpop.f32.mrb[4].mxu1  ;;  %v1008_v59 = vpop.f32.mrb[5].mxu0 }
 0x1f5   : > { %v1081_v60 = vadd.f32 %v1426_v58, %v1784_v55  ;;  %v1009_v61 = vadd.f32 %v1784_v55, %v1008_v59  ;;  %v1072_v62 = vpop.f32.mrb[5].mxu1  ;;  %v1411_v63 = vpop.f32.mrb[6].mxu0 }
 0x1f6   : > { %1126 = vst.msk [vmem:[%s1616_s12 + $0x30] sm:$0xff] %vm1119_vm4, %v1017_v57  ;;  %v1073_v0 = vadd.f32 %v1784_v55, %v1072_v62  ;;  %v1020_v1 = vadd.f32 %v1411_v63, %v1784_v55  ;;  %v1427_v2 = vpop.f32.mrb[6].mxu1  ;;  %v1011_v3 = vpop.f32.mrb[7].mxu0 }
 0x1f7   : > { %1142 = vst.msk [vmem:[%s1616_s12 + $0xb0] sm:$0xff] %vm1119_vm4, %v1081_v60  ;;  %1124 = vst.msk [vmem:[%s1616_s12 + $0x20] sm:$0xff] %vm1119_vm4, %v1009_v61  ;;  %v1084_v4 = vadd.f32 %v1427_v2, %v1784_v55  ;;  %v1012_v5 = vadd.f32 %v1784_v55, %v1011_v3  ;;  %v1075_v6 = vpop.f32.mrb[7].mxu1 }
 0x1f8   : > { %1140 = vst.msk [vmem:[%s1616_s12 + $0xa0] sm:$0xff] %vm1119_vm4, %v1073_v0  ;;  %1127 = vst.msk [vmem:[%s1616_s12 + $0x38] sm:$0xff] %vm1119_vm4, %v1020_v1  ;;  %v1076_v7 = vadd.f32 %v1784_v55, %v1075_v6 }
 0x1f9   : > { %1143 = vst.msk [vmem:[%s1616_s12 + $0xb8] sm:$0xff] %vm1119_vm4, %v1084_v4  ;;  %1125 = vst.msk [vmem:[%s1616_s12 + $0x28] sm:$0xff] %vm1119_vm4, %v1012_v5 }
 0x1fa   : > { %1141 = vst.msk [vmem:[%s1616_s12 + $0xa8] sm:$0xff] %vm1119_vm4, %v1076_v7 }
 0x1fb   : > { %v1414_v8 = vpop.f32.mrb[8].mxu0 }
 0x1fc   : > { %v1033_v9 = vadd.f32 %v1414_v8, %v1784_v55  ;;  %v1430_v10 = vpop.f32.mrb[8].mxu1  ;;  %v1024_v11 = vpop.f32.mrb[9].mxu0 }
 0x1fd   : > { %v1097_v12 = vadd.f32 %v1430_v10, %v1784_v55  ;;  %v1025_v13 = vadd.f32 %v1784_v55, %v1024_v11  ;;  %v1088_v14 = vpop.f32.mrb[9].mxu1  ;;  %v1415_v15 = vpop.f32.mrb[10].mxu0 }
 0x1fe   : > { %1130 = vst.msk [vmem:[%s1616_s12 + $0x50] sm:$0xff] %vm1119_vm4, %v1033_v9  ;;  %v1089_v16 = vadd.f32 %v1784_v55, %v1088_v14  ;;  %v1036_v17 = vadd.f32 %v1415_v15, %v1784_v55  ;;  %v1431_v18 = vpop.f32.mrb[10].mxu1  ;;  %v1027_v19 = vpop.f32.mrb[11].mxu0 }
 0x1ff   : > { %1146 = vst.msk [vmem:[%s1616_s12 + $0xd0] sm:$0xff] %vm1119_vm4, %v1097_v12  ;;  %1128 = vst.msk [vmem:[%s1616_s12 + $0x40] sm:$0xff] %vm1119_vm4, %v1025_v13  ;;  %v1100_v20 = vadd.f32 %v1431_v18, %v1784_v55  ;;  %v1028_v21 = vadd.f32 %v1784_v55, %v1027_v19  ;;  %v1091_v22 = vpop.f32.mrb[11].mxu1 }
 0x200   : > { %1144 = vst.msk [vmem:[%s1616_s12 + $0xc0] sm:$0xff] %vm1119_vm4, %v1089_v16  ;;  %1131 = vst.msk [vmem:[%s1616_s12 + $0x58] sm:$0xff] %vm1119_vm4, %v1036_v17  ;;  %v1092_v23 = vadd.f32 %v1784_v55, %v1091_v22 }
 0x201   : > { %1147 = vst.msk [vmem:[%s1616_s12 + $0xd8] sm:$0xff] %vm1119_vm4, %v1100_v20  ;;  %1129 = vst.msk [vmem:[%s1616_s12 + $0x48] sm:$0xff] %vm1119_vm4, %v1028_v21 }
 0x202   : > { %1145 = vst.msk [vmem:[%s1616_s12 + $0xc8] sm:$0xff] %vm1119_vm4, %v1092_v23 }
 0x203   : > { %v1418_v24 = vpop.f32.mrb[12].mxu0 }
 0x204   : > { %v1049_v25 = vadd.f32 %v1418_v24, %v1784_v55  ;;  %v1434_v26 = vpop.f32.mrb[12].mxu1  ;;  %v1040_v27 = vpop.f32.mrb[13].mxu0 }
 0x205   : > { %v1113_v28 = vadd.f32 %v1434_v26, %v1784_v55  ;;  %v1041_v29 = vadd.f32 %v1784_v55, %v1040_v27  ;;  %v1104_v30 = vpop.f32.mrb[13].mxu1  ;;  %v1419_v31 = vpop.f32.mrb[14].mxu0 }
 0x206   : > { %1134 = vst.msk [vmem:[%s1616_s12 + $0x70] sm:$0xff] %vm1119_vm4, %v1049_v25  ;;  %v1105_v32 = vadd.f32 %v1784_v55, %v1104_v30  ;;  %v1052_v33 = vadd.f32 %v1419_v31, %v1784_v55  ;;  %v1435_v34 = vpop.f32.mrb[14].mxu1  ;;  %v1043_v35 = vpop.f32.mrb[15].mxu0 }
 0x207   : > { %1150 = vst.msk [vmem:[%s1616_s12 + $0xf0] sm:$0xff] %vm1119_vm4, %v1113_v28  ;;  %1132 = vst.msk [vmem:[%s1616_s12 + $0x60] sm:$0xff] %vm1119_vm4, %v1041_v29  ;;  %v1116_v36 = vadd.f32 %v1435_v34, %v1784_v55  ;;  %v1044_v37 = vadd.f32 %v1784_v55, %v1043_v35  ;;  %v1107_v38 = vpop.f32.mrb[15].mxu1 }
 0x208   : > { %1148 = vst.msk [vmem:[%s1616_s12 + $0xe0] sm:$0xff] %vm1119_vm4, %v1105_v32  ;;  %1135 = vst.msk [vmem:[%s1616_s12 + $0x78] sm:$0xff] %vm1119_vm4, %v1052_v33  ;;  %v1108_v39 = vadd.f32 %v1784_v55, %v1107_v38 }
 0x209   : > { %1151 = vst.msk [vmem:[%s1616_s12 + $0xf8] sm:$0xff] %vm1119_vm4, %v1116_v36  ;;  %1133 = vst.msk [vmem:[%s1616_s12 + $0x68] sm:$0xff] %vm1119_vm4, %v1044_v37 }
 0x20a   : > { %1149 = vst.msk [vmem:[%s1616_s12 + $0xe8] sm:$0xff] %vm1119_vm4, %v1108_v39 }
 0x20b PF: > { %s15_s22 = sadd.s32 1, %s1541_s22   ;;  %s1903_s18 = smov %s1533_s20 }
 0x20c   : > { %p12_p9 = scmp.ge.s32.totalorder %s15_s22, 20   ;;  %s1904_s19 = smov %s1537_s21 }
 0x20d   : > { %s1905_s20 = smov %s1908_s23  ;;  %s1906_s21 = smov %s1912_s24 }
 0x20e   :  { %14 = sbr.rel (!%p12_p9) target bundleno = 3 (0x3), region = 81 }

</bundles_post_ra>
